<compile_context>
chip_gen: v7x
topology: tpu7x:2x2x1
jax: 0.10.0
libtpu: 0.0.40
codegen_flags: <defaults>
</compile_context>

<pallas_src>
import functools

import jax
import jax.numpy as jnp
from jax.experimental import pallas as pl
from jax.experimental.pallas import tpu as pltpu

_SUBLANE = 8  # vreg sublane width (second-to-last dim granularity)


def _round_up(n, m):
    return ((n + m - 1) // m) * m


def _fcnn_kernel(x_ref, w1_ref, b1_ref, w2_ref, b2_ref, w3_ref, b3_ref, o_ref):
    # Layer 1: Linear(dim_in -> n_units) + ReLU   (bf16 MXU inputs, f32 acc)
    x = x_ref[...].astype(jnp.bfloat16)
    h = jnp.dot(x, w1_ref[...], preferred_element_type=jnp.float32) + b1_ref[...]
    h = jnp.maximum(h, 0.0)

    # ResNet block: h + ReLU(Linear(n_units -> n_units)(h))
    r = jnp.dot(h.astype(jnp.bfloat16), w2_ref[...],
                preferred_element_type=jnp.float32) + b2_ref[...]
    h = h + jnp.maximum(r, 0.0)

    # Output layer: Linear(n_units -> dim_out), no activation
    y = jnp.dot(h.astype(jnp.bfloat16), w3_ref[...],
                preferred_element_type=jnp.float32) + b3_ref[...]
    o_ref[...] = y.astype(o_ref.dtype)


@functools.partial(jax.jit, static_argnames=("batch_tile",))
def fcnn_forward(x, params, batch_tile=1024):
    """x: (B, dim_in) f32. params: dict of W1,b1,W2,b2,W3,b3 (f32). Handles any B."""
    # bf16 weights halve the (VMEM-resident) weight DMA; biases stay f32 and
    # are added to the f32 accumulator.
    w1 = params["W1"].astype(jnp.bfloat16)
    w2 = params["W2"].astype(jnp.bfloat16)
    w3 = params["W3"].astype(jnp.bfloat16)
    b1, b2, b3 = params["b1"], params["b2"], params["b3"]

    B, dim_in = x.shape
    n_units = w1.shape[1]
    dim_out = w3.shape[1]

    # Batch tile: a multiple of 8, <= batch_tile, chosen so the grid has at
    # least 2 steps whenever B > 8 (keeps v7x's 2nd TensorCore busy). No batch
    # padding — pl.cdiv grid lets Pallas mask the partial last block, and the
    # computation has no cross-row coupling so the overhang is inert.
    bt = min(int(batch_tile), _round_up(pl.cdiv(B, 2), _SUBLANE))
    grid = (pl.cdiv(B, bt),)

    # ---- VMEM budget from the actual footprint (v7x has only 64 MiB/TC) ----
    weight_bytes = 2 * (dim_in * n_units + n_units * n_units + n_units * dim_out)  # bf16
    bias_bytes = 4 * (2 * n_units + dim_out)                                       # f32
    act_tile_bytes = bt * (dim_in + dim_out) * 4                                   # f32 x/out tile
    vmem_limit = 2 * (act_tile_bytes + weight_bytes + bias_bytes) + (8 << 20)      # dbl-buf + headroom
    vmem_limit = int(min(max(vmem_limit, 16 << 20), 48 << 20))

    # ---- advisory cost estimate for the XLA scheduler ----
    flops = 2 * B * (dim_in * n_units + n_units * n_units + n_units * dim_out)
    bytes_accessed = 4 * B * (dim_in + dim_out) + weight_bytes + bias_bytes
    cost = pl.CostEstimate(flops=flops, transcendentals=0, bytes_accessed=bytes_accessed)

    # Batch is tiled across the (parallel) grid; weights/biases use constant
    # index maps so they stay VMEM-resident and are not re-DMA'd per step.
    # Blocks use the true dim_in/dim_out widths (full-array last dim is legal
    # even when < 128) — masked narrow loads/stores, no padded HBM traffic.
    in_specs = [
        pl.BlockSpec((bt, dim_in), lambda i: (i, 0)),          # x
        pl.BlockSpec((dim_in, n_units), lambda i: (0, 0)),     # W1 (bf16)
        pl.BlockSpec((1, n_units), lambda i: (0, 0)),          # b1
        pl.BlockSpec((n_units, n_units), lambda i: (0, 0)),    # W2 (bf16)
        pl.BlockSpec((1, n_units), lambda i: (0, 0)),          # b2
        pl.BlockSpec((n_units, dim_out), lambda i: (0, 0)),    # W3 (bf16)
        pl.BlockSpec((1, dim_out), lambda i: (0, 0)),          # b3
    ]
    out_spec = pl.BlockSpec((bt, dim_out), lambda i: (i, 0))

    out = pl.pallas_call(
        _fcnn_kernel,
        out_shape=jax.ShapeDtypeStruct((B, dim_out), jnp.float32),
        grid_spec=pltpu.PrefetchScalarGridSpec(
            num_scalar_prefetch=0,
            grid=grid,
            in_specs=in_specs,
            out_specs=out_spec,
        ),
        compiler_params=pltpu.CompilerParams(
            dimension_semantics=("parallel",),   # batch axis shards across TCs (v7x)
            vmem_limit_bytes=vmem_limit,
        ),
        cost_estimate=cost,
    )(x, w1, b1, w2, b2, w3, b3)
    return out


def init_params(key, dim_in, dim_out, n_units=128):
    """Deterministic synthetic parameters (shapes match FCNN.__init__ defaults)."""
    ks = jax.random.split(key, 6)
    scale1 = 1.0 / jnp.sqrt(dim_in)
    scale2 = 1.0 / jnp.sqrt(n_units)
    return {
        "W1": jax.random.uniform(ks[0], (dim_in, n_units), jnp.float32, -scale1, scale1),
        "b1": jax.random.uniform(ks[1], (1, n_units), jnp.float32, -scale1, scale1),
        "W2": jax.random.uniform(ks[2], (n_units, n_units), jnp.float32, -scale2, scale2),
        "b2": jax.random.uniform(ks[3], (1, n_units), jnp.float32, -scale2, scale2),
        "W3": jax.random.uniform(ks[4], (n_units, dim_out), jnp.float32, -scale2, scale2),
        "b3": jax.random.uniform(ks[5], (1, dim_out), jnp.float32, -scale2, scale2),
    }


def fcnn_reference(x, p):
    h = jnp.maximum(x @ p["W1"] + p["b1"], 0.0)
    h = h + jnp.maximum(h @ p["W2"] + p["b2"], 0.0)
    return h @ p["W3"] + p["b3"]


if __name__ == "__main__":
    key = jax.random.PRNGKey(0)
    k_param, k_x = jax.random.split(key)

    # Small demo shapes (tile adapts: bt=8, grid=(2,)); large B uses up to 1024-row tiles.
    B, dim_in, dim_out, n_units = 16, 16, 8, 128
    params = init_params(k_param, dim_in, dim_out, n_units)
    x = jax.random.normal(k_x, (B, dim_in), dtype=jnp.float32)

    y = jax.block_until_ready(fcnn_forward(x, params))
    y_ref = fcnn_reference(x, params)

    assert y.shape == (B, dim_out)
    # bf16 MXU inputs with f32 accumulation -> loosened tolerance vs f32 reference.
    assert jnp.allclose(y, y_ref, atol=3e-2, rtol=3e-2), "mismatch vs JAX reference"

    print("KERNEL_OK")
</pallas_src>

<mosaic_0001>
module attributes {stable_mosaic.version = 11 : i64} {
  func.func @_fcnn_kernel(%arg0: i32, %arg1: memref<8x16xf32, #tpu.memory_space<vmem>>, %arg2: memref<16x128xbf16, #tpu.memory_space<vmem>>, %arg3: memref<1x128xf32, #tpu.memory_space<vmem>>, %arg4: memref<128x128xbf16, #tpu.memory_space<vmem>>, %arg5: memref<1x128xf32, #tpu.memory_space<vmem>>, %arg6: memref<128x8xbf16, #tpu.memory_space<vmem>>, %arg7: memref<1x8xf32, #tpu.memory_space<vmem>>, %arg8: memref<8x8xf32, #tpu.memory_space<vmem>>) attributes {dimension_semantics = [#tpu.dimension_semantics<parallel>], iteration_bounds = array<i64: 2>, scalar_prefetch = 0 : i64, scratch_operands = 0 : i64, tpu.core_type = #tpu.core_type<tc>, window_params = [{transform_indices = @transform_0, window_bounds = array<i64: 8, 16>}, {pipeline_mode = #tpu.pipeline_mode<synchronous>, transform_indices = @transform_1, window_bounds = array<i64: 16, 128>}, {pipeline_mode = #tpu.pipeline_mode<synchronous>, transform_indices = @transform_2, window_bounds = array<i64: 1, 128>}, {pipeline_mode = #tpu.pipeline_mode<synchronous>, transform_indices = @transform_3, window_bounds = array<i64: 128, 128>}, {pipeline_mode = #tpu.pipeline_mode<synchronous>, transform_indices = @transform_4, window_bounds = array<i64: 1, 128>}, {pipeline_mode = #tpu.pipeline_mode<synchronous>, transform_indices = @transform_5, window_bounds = array<i64: 128, 8>}, {pipeline_mode = #tpu.pipeline_mode<synchronous>, transform_indices = @transform_6, window_bounds = array<i64: 1, 8>}, {transform_indices = @transform_7, window_bounds = array<i64: 8, 8>}]} {
    %c0 = arith.constant 0 : index
    %c0_0 = arith.constant 0 : index
    %0 = vector.load %arg1[%c0, %c0_0] : memref<8x16xf32, #tpu.memory_space<vmem>>, vector<8x16xf32>
    %1 = arith.truncf %0 : vector<8x16xf32> to vector<8x16xbf16>
    %c0_1 = arith.constant 0 : index
    %c0_2 = arith.constant 0 : index
    %2 = vector.load %arg2[%c0_1, %c0_2] : memref<16x128xbf16, #tpu.memory_space<vmem>>, vector<16x128xbf16>
    %cst = arith.constant dense<0.000000e+00> : vector<8x128xf32>
    %3 = tpu.matmul %1, %2, %cst {dimension_numbers = #tpu.dot_dimension_numbers<[1], [0], [0], [1], [0, 0, 1, 1], [], []>} : vector<8x16xbf16>, vector<16x128xbf16>, vector<8x128xf32> -> vector<8x128xf32>
    %c0_3 = arith.constant 0 : index
    %c0_4 = arith.constant 0 : index
    %4 = vector.load %arg3[%c0_3, %c0_4] : memref<1x128xf32, #tpu.memory_space<vmem>>, vector<1x128xf32>
    %5 = vector.broadcast %4 : vector<1x128xf32> to vector<8x128xf32>
    %6 = arith.addf %3, %5 : vector<8x128xf32>
    %cst_5 = arith.constant 0.000000e+00 : f32
    %7 = vector.broadcast %cst_5 : f32 to vector<8x128xf32>
    %8 = arith.maximumf %6, %7 : vector<8x128xf32>
    %9 = arith.truncf %8 : vector<8x128xf32> to vector<8x128xbf16>
    %c0_6 = arith.constant 0 : index
    %c0_7 = arith.constant 0 : index
    %10 = vector.load %arg4[%c0_6, %c0_7] : memref<128x128xbf16, #tpu.memory_space<vmem>>, vector<128x128xbf16>
    %cst_8 = arith.constant dense<0.000000e+00> : vector<8x128xf32>
    %11 = tpu.matmul %9, %10, %cst_8 {dimension_numbers = #tpu.dot_dimension_numbers<[1], [0], [0], [1], [0, 0, 1, 1], [], []>} : vector<8x128xbf16>, vector<128x128xbf16>, vector<8x128xf32> -> vector<8x128xf32>
    %c0_9 = arith.constant 0 : index
    %c0_10 = arith.constant 0 : index
    %12 = vector.load %arg5[%c0_9, %c0_10] : memref<1x128xf32, #tpu.memory_space<vmem>>, vector<1x128xf32>
    %13 = vector.broadcast %12 : vector<1x128xf32> to vector<8x128xf32>
    %14 = arith.addf %11, %13 : vector<8x128xf32>
    %cst_11 = arith.constant 0.000000e+00 : f32
    %15 = vector.broadcast %cst_11 : f32 to vector<8x128xf32>
    %16 = arith.maximumf %14, %15 : vector<8x128xf32>
    %17 = arith.addf %8, %16 : vector<8x128xf32>
    %18 = arith.truncf %17 : vector<8x128xf32> to vector<8x128xbf16>
    %c0_12 = arith.constant 0 : index
    %c0_13 = arith.constant 0 : index
    %19 = vector.load %arg6[%c0_12, %c0_13] : memref<128x8xbf16, #tpu.memory_space<vmem>>, vector<128x8xbf16>
    %cst_14 = arith.constant dense<0.000000e+00> : vector<8x8xf32>
    %20 = tpu.matmul %18, %19, %cst_14 {dimension_numbers = #tpu.dot_dimension_numbers<[1], [0], [0], [1], [0, 0, 1, 1], [], []>} : vector<8x128xbf16>, vector<128x8xbf16>, vector<8x8xf32> -> vector<8x8xf32>
    %c0_15 = arith.constant 0 : index
    %c0_16 = arith.constant 0 : index
    %21 = vector.load %arg7[%c0_15, %c0_16] : memref<1x8xf32, #tpu.memory_space<vmem>>, vector<1x8xf32>
    %22 = vector.broadcast %21 : vector<1x8xf32> to vector<8x8xf32>
    %23 = arith.addf %20, %22 : vector<8x8xf32>
    %c0_17 = arith.constant 0 : index
    %c0_18 = arith.constant 0 : index
    %24 = vector.load %arg8[%c0_17, %c0_18] : memref<8x8xf32, #tpu.memory_space<vmem>>, vector<8x8xf32>
    tpu.vector_store %arg8[%c0_17, %c0_18], %23 {strides = array<i32>} : memref<8x8xf32, #tpu.memory_space<vmem>>, vector<8x8xf32>,
    return
  }
  func.func @transform_0(%arg0: i32) -> (i32, i32) {
    %c0_i32 = arith.constant 0 : i32
    %c0_i32_0 = arith.constant 0 : i32
    return %arg0, %c0_i32 : i32, i32
  }
  func.func @transform_1(%arg0: i32) -> (i32, i32) {
    %c0_i32 = arith.constant 0 : i32
    %c0_i32_0 = arith.constant 0 : i32
    %c0_i32_1 = arith.constant 0 : i32
    return %c0_i32, %c0_i32_0 : i32, i32
  }
  func.func @transform_2(%arg0: i32) -> (i32, i32) {
    %c0_i32 = arith.constant 0 : i32
    %c0_i32_0 = arith.constant 0 : i32
    %c0_i32_1 = arith.constant 0 : i32
    return %c0_i32, %c0_i32_0 : i32, i32
  }
  func.func @transform_3(%arg0: i32) -> (i32, i32) {
    %c0_i32 = arith.constant 0 : i32
    %c0_i32_0 = arith.constant 0 : i32
    %c0_i32_1 = arith.constant 0 : i32
    return %c0_i32, %c0_i32_0 : i32, i32
  }
  func.func @transform_4(%arg0: i32) -> (i32, i32) {
    %c0_i32 = arith.constant 0 : i32
    %c0_i32_0 = arith.constant 0 : i32
    %c0_i32_1 = arith.constant 0 : i32
    return %c0_i32, %c0_i32_0 : i32, i32
  }
  func.func @transform_5(%arg0: i32) -> (i32, i32) {
    %c0_i32 = arith.constant 0 : i32
    %c0_i32_0 = arith.constant 0 : i32
    %c0_i32_1 = arith.constant 0 : i32
    return %c0_i32, %c0_i32_0 : i32, i32
  }
  func.func @transform_6(%arg0: i32) -> (i32, i32) {
    %c0_i32 = arith.constant 0 : i32
    %c0_i32_0 = arith.constant 0 : i32
    %c0_i32_1 = arith.constant 0 : i32
    return %c0_i32, %c0_i32_0 : i32, i32
  }
  func.func @transform_7(%arg0: i32) -> (i32, i32) {
    %c0_i32 = arith.constant 0 : i32
    %c0_i32_0 = arith.constant 0 : i32
    return %arg0, %c0_i32 : i32, i32
  }
}

</mosaic_0001>

<bundles_post_ra>
// kernel: fcnn_forward.1
= control target key start
LH: loop header
LB: loop body
LE: loop exit
PB: predicated region body
PF: predicated region fallthrough
CT: control target
= control target key end

     0   :  { %s791_s24 = smov 0   ;;  %s898_s0 = inlined_call_operand.vmem [shape: f32[16,16], index: 0, kind: input, shape index: {}]   ;;  %s899_s1 = inlined_call_operand.vmem [shape: bf16[16,128], index: 1, kind: input, shape index: {}]   ;;  %s900_s2 = inlined_call_operand.vmem [shape: f32[1,128], index: 2, kind: input, shape index: {}]   ;;  %s901_s3 = inlined_call_operand.vmem [shape: bf16[128,128], index: 3, kind: input, shape index: {}]   ;;  %s902_s4 = inlined_call_operand.vmem [shape: f32[1,128], index: 4, kind: input, shape index: {}]   ;;  %s903_s5 = inlined_call_operand.vmem [shape: bf16[128,8], index: 5, kind: input, shape index: {}]   ;;  %s904_s6 = inlined_call_operand.vmem [shape: f32[1,8], index: 6, kind: input, shape index: {}]   ;;  %s905_s7 = inlined_call_operand.vmem [shape: f32[16,8], index: 7, kind: output, shape index: {}]  }
   0x1 LB: > { %s618_s25 = sadd.s32 4294967295, %s747_s24   ;;  %p622_p0 = scmp.ge.s32.totalorder %s747_s24, 1  ;;  %s747_s24 = sphi %s791_s24, %s17_s24  }
   0x2   : > { %p236_p1 = scmp.lt.s32.totalorder %s747_s24, 3 }
   0x4   : > { %p237_p2 = pnand %p622_p0, %p236_p1 }
   0x5   : > { %v724_v0 = vld [vmem:[%s899_s1] sm:$0xff] (!%p237_p2)   ;;  %v749_v1 = vmov (!%p237_p2), 0.0   ;;  %p266_p3 = scmp.lt.s32.totalorder (!%p237_p2), %s618_s25, 1  ;;  %vm750_vm0 = vmmov (!%p237_p2), 0   ;;  %v726_v3 = vld [vmem:[%s901_s3 + $0x8] sm:$0xff] (!%p237_p2)   ;;  %vm292_vm1 = vcmask (!%p237_p2), 130048  }
   0x6   : > { %240 = sbr.rel (%p237_p2) target bundleno = 672 (0x2a0), region = 48  ;;  %668 = vmatprep.subr.bf16.mxu0 (!%p237_p2), %v749_v1  ;;  %674 = vmatprep.subr.bf16.mxu1 (!%p237_p2), %v749_v1  ;;  %v725_v2 = vld [vmem:[%s901_s3] sm:$0xff] (!%p237_p2)   ;;  %v727_v5 = vld [vmem:[%s901_s3 + $0x10] sm:$0xff] (!%p237_p2)   ;;  %v728_v7 = vld [vmem:[%s901_s3 + $0x18] sm:$0xff] (!%p237_p2)   ;;  %vm563_vm2 = vcmask (!%p237_p2), 64512  }
   0x7   : > { %669 = vmatpush3.bf16.msra.mxu0 (!%p237_p2), %v724_v0  ;;  %670 = vmatprep.mubr.msk.bf16.mxu0 (!%p237_p2), %vm750_vm0, %v749_v1  ;;  %v729_v8 = vld [vmem:[%s901_s3 + $0x20] sm:$0xff] (!%p237_p2)   ;;  %v730_v9 = vld [vmem:[%s901_s3 + $0x28] sm:$0xff] (!%p237_p2)   ;;  %v731_v10 = vld [vmem:[%s901_s3 + $0x30] sm:$0xff] (!%p237_p2)  }
   0x8   : > { %675 = vmatpush3.bf16.msra.mxu1 (!%p237_p2), %v725_v2  ;;  %690 = vmatprep.mubr.msk.bf16.mxu1 (!%p237_p2), %vm750_vm0, %v749_v1  ;;  %v732_v11 = vld [vmem:[%s901_s3 + $0x38] sm:$0xff] (!%p237_p2)   ;;  %v733_v12 = vld [vmem:[%s903_s5] sm:$0xff] (!%p237_p2)   ;;  %v734_v13 = vld [vmem:[%s903_s5 + $0x8] sm:$0xff] (!%p237_p2)  }
   0x9   : > { %676 = vmatprep.subr.bf16.mxu1 (!%p237_p2), %v749_v1  ;;  %694 = vmatprep.subr.bf16.mxu0 (!%p237_p2), %v749_v1  ;;  %v735_v14 = vld [vmem:[%s903_s5 + $0x10] sm:$0xff] (!%p237_p2)   ;;  %v736_v15 = vld [vmem:[%s903_s5 + $0x18] sm:$0xff] (!%p237_p2)   ;;  %v737_v16 = vld [vmem:[%s903_s5 + $0x20] sm:$0xff] (!%p237_p2)  }
   0xa   : > { %v738_v17 = vld [vmem:[%s903_s5 + $0x28] sm:$0xff] (!%p237_p2)   ;;  %v625_v18 = vld [vmem:[%s900_s2] ss:$0 sm:$0xff] (!%p237_p2)  ;;  %v739_v26 = vld [vmem:[%s903_s5 + $0x30] sm:$0xff] (!%p237_p2)  }
   0xb   : > { %v740_v27 = vld [vmem:[%s903_s5 + $0x38] sm:$0xff] (!%p237_p2)   ;;  %v628_v28 = vld [vmem:[%s902_s4] ss:$0 sm:$0xff] (!%p237_p2) }
   0xc   : > { %677 = vmatpush3.bf16.msra.mxu1 (!%p237_p2), %v726_v3  ;;  %v637_v37 = vld [vmem:[%s904_s6] ss:$0 sm:$0xff] (!%p237_p2) }
   0xd   : > { %s907_s25 = smov (!%p266_p3, %s618_s25), 1  ;;  %678 = vmatprep.subr.bf16.mxu1 %v749_v1 }
   0xe   : > { %s623_s9 = sshll.u32 %s907_s25, 3 }
   0xf   : > { %s269_s12 = scalar_lea.vmem %s898_s0, %s623_s9  ;;  %s273_s8 = scalar_lea.vmem %s905_s7, %s623_s9 }
  0x10   : > { %v275_v4 = vld [vmem:[%s269_s12] sm:$0xff]  ;;  %679 = vmatpush3.bf16.msra.mxu1 %v727_v5 }
  0x11   : > { %v276_v6 = vpack.c.bf16 %v275_v4, %v275_v4  ;;  %680 = vmatprep.subr.bf16.mxu1 %v749_v1 }
  0x13   : > { %671 = vmatmul.mubr.msk.bf16.vlgmr.msra.gmra.mrb[0].mxu0 %vm292_vm1, %v276_v6 }
  0x14   : > { %710 = vmatprep.mubr.msk.bf16.mxu0 %vm750_vm0, %v749_v1  ;;  %681 = vmatpush3.bf16.msra.mxu1 %v728_v7 }
  0x15   : > { %682 = vmatprep.subr.bf16.mxu1 %v749_v1  ;;  %695 = vmatpush3.bf16.msra.mxu0 %v733_v12 }
  0x16   : > { %696 = vmatprep.subr.bf16.mxu0 %v749_v1 }
  0x18   : > { %683 = vmatpush3.bf16.msra.mxu1 %v729_v8 }
  0x19   : > { %684 = vmatprep.subr.bf16.mxu1 %v749_v1  ;;  %697 = vmatpush3.bf16.msra.mxu0 %v734_v13 }
  0x1a   : > { %698 = vmatprep.subr.bf16.mxu0 %v749_v1 }
  0x1c   : > { %685 = vmatpush3.bf16.msra.mxu1 %v730_v9 }
  0x1d   : > { %686 = vmatprep.subr.bf16.mxu1 %v749_v1  ;;  %699 = vmatpush3.bf16.msra.mxu0 %v735_v14 }
  0x1e   : > { %700 = vmatprep.subr.bf16.mxu0 %v749_v1 }
  0x20   : > { %687 = vmatpush3.bf16.msra.mxu1 %v731_v10 }
  0x21   : > { %688 = vmatprep.subr.bf16.mxu1 %v749_v1  ;;  %701 = vmatpush3.bf16.msra.mxu0 %v736_v15 }
  0x22   : > { %702 = vmatprep.subr.bf16.mxu0 %v749_v1 }
  0x24   : > { %689 = vmatpush3.bf16.msra.mxu1 %v732_v11 }
  0x25   : > { %703 = vmatpush3.bf16.msra.mxu0 %v737_v16 }
  0x26   : > { %704 = vmatprep.subr.bf16.mxu0 %v749_v1 }
  0x29   : > { %705 = vmatpush3.bf16.msra.mxu0 %v738_v17 }
  0x2a   : > { %706 = vmatprep.subr.bf16.mxu0 %v749_v1 }
  0x2d   : > { %707 = vmatpush3.bf16.msra.mxu0 %v739_v26 }
  0x2e   : > { %708 = vmatprep.subr.bf16.mxu0 %v749_v1 }
  0x31   : > { %709 = vmatpush3.bf16.msra.mxu0 %v740_v27 }
  0xe6   : > { %v330_v19 = vpop.f32.mrb[0].mxu0 }
  0xe7   : > { %v331_v20 = vadd.f32 %v625_v18, %v330_v19  ;;  %v672_v21 = vpop.f32.mrb[1].mxu0 }
  0xe8   : > { %v333_v22 = vpop.f32.mrb[2].mxu0 }
  0xe9   : > { %v336_v23 = vmax.f32 %v331_v20, 0.0  ;;  %v673_v24 = vpop.f32.mrb[3].mxu0 }
  0xeb   : > { %v337_v25 = vpack.c.bf16 %v336_v23, %v336_v23 }
  0xed   : > { %691 = vmatmul.mubr.bf16.vlgmr.msra.gmra.mrb[0].mxu1 %v337_v25 }
 0x1c0   : > { %v443_v29 = vpop.f32.mrb[0].mxu1 }
 0x1c1   : > { %v444_v30 = vadd.f32 %v628_v28, %v443_v29  ;;  %v692_v31 = vpop.f32.mrb[1].mxu1 }
 0x1c2   : > { %v446_v32 = vpop.f32.mrb[2].mxu1 }
 0x1c3   : > { %v449_v33 = vmax.f32 %v444_v30, 0.0  ;;  %v693_v34 = vpop.f32.mrb[3].mxu1 }
 0x1c5   : > { %v450_v35 = vadd.f32 %v449_v33, %v336_v23 }
 0x1c7   : > { %v451_v36 = vpack.c.bf16 %v450_v35, %v450_v35 }
 0x1c9   : > { %711 = vmatmul.mubr.bf16.vlgmr.msra.gmra.mrb[4].mxu0 %v451_v36 }
 0x29c   : > { %v557_v38 = vpop.f32.mrb[4].mxu0 }
 0x29d   : > { %v558_v39 = vadd.f32 %v637_v37, %v557_v38  ;;  %v712_v40 = vpop.f32.mrb[5].mxu0 }
 0x29e   : > { %v560_v41 = vpop.f32.mrb[6].mxu0 }
 0x29f   : > { %564 = vst.msk [vmem:[%s273_s8] sm:$0xff] %vm563_vm2, %v558_v39  ;;  %v713_v42 = vpop.f32.mrb[7].mxu0 }
 0x2a0 PF: > { %s17_s24 = sadd.s32 1, %s747_s24  }
 0x2a1   : > { %p14_p4 = scmp.ge.s32.totalorder %s17_s24, 4  }
 0x2a3   :  { %16 = sbr.rel (!%p14_p4) target bundleno = 1 (0x1), region = 78 }

</bundles_post_ra>
